<compile_context>
chip_gen: v7x
topology: tpu7x:2x2x1
jax: 0.10.0
libtpu: 0.0.40
codegen_flags: <defaults>
</compile_context>

<pallas_src>
import jax
import jax.numpy as jnp
from jax import lax
from jax.experimental import pallas as pl
from jax.experimental.pallas import tpu as pltpu

# ----------------------------- hyper params ---------------------------------
CATE_NUM = 3       # categorical features per timestep
CATE_EMB = 8       # cate_emb_dim
OFFSET = 10        # embedding vocab size (padding_idx = 0)
CATE_PROJ = 16     # cate_proj_dim
LN_EPS = 1e-5

K_HOT = CATE_NUM * OFFSET          # 30: folded-table rows / one-hot width
TILE_N_MAX = 512                   # rows per grid step for large B*S


def _round_up(x, m):
    return (x + m - 1) // m * m


# ------------------------------- kernel --------------------------------------
def cate_proj_kernel(idx_ref, tbl_ref, out_ref):
    """Fused Embedding(gather) -> Linear -> LayerNorm for one row tile.

    idx_ref : (TILE_N, CATE_NUM) int32           category ids
    tbl_ref : (K_HOT + 3, CATE_PROJ) f32         rows [0,K_HOT): folded emb@W,
                                                  row K_HOT: bias, +1: gamma, +2: beta
    out_ref : (TILE_N, CATE_PROJ) f32
    """
    n = idx_ref.shape[0]

    # Multi-hot over shifted ids: column j*OFFSET + idx[:, j] is 1 for each j.
    # 3 VPU compares + adds, then a single (n, 30) @ (30, proj) MXU matmul.
    col = lax.broadcasted_iota(jnp.int32, (n, K_HOT), 1)
    hot = jnp.zeros((n, K_HOT), jnp.float32)
    for j in range(CATE_NUM):                                   # static, unrolled
        hot = hot + (idx_ref[:, j:j + 1] + j * OFFSET == col).astype(jnp.float32)

    folded = tbl_ref[0:K_HOT, :]                                # (30, proj)
    bias = tbl_ref[K_HOT:K_HOT + 1, :]                          # (1, proj)
    gamma = tbl_ref[K_HOT + 1:K_HOT + 2, :]
    beta = tbl_ref[K_HOT + 2:K_HOT + 3, :]

    x = jnp.dot(hot, folded, preferred_element_type=jnp.float32) + bias

    # LayerNorm over the last (proj) dimension.
    mu = jnp.mean(x, axis=-1, keepdims=True)
    var = jnp.mean((x - mu) ** 2, axis=-1, keepdims=True)
    out_ref[...] = (x - mu) * lax.rsqrt(var + LN_EPS) * gamma + beta


# ------------------------------ wrapper ---------------------------------------
@jax.jit
def cate_embedding_projector(cate_x, params):
    # cate_x: (B, S, CATE_NUM) int  ->  (B, S, CATE_PROJ) float32
    b, s, _ = cate_x.shape
    n = b * s
    idx = cate_x.reshape(n, CATE_NUM).astype(jnp.int32)

    # Input-independent weight fold: gather(emb, idx).reshape(-1) @ W
    #   == multihot(idx) @ folded, with folded[j*OFFSET + o] = emb[o] @ W_j.
    w3 = params["w"].reshape(CATE_NUM, CATE_EMB, CATE_PROJ)
    folded = jnp.einsum("oe,jep->jop", params["emb"], w3).reshape(K_HOT, CATE_PROJ)
    tbl = jnp.concatenate(
        [folded, params["b"], params["gamma"], params["beta"]], axis=0
    ).astype(jnp.float32)                                       # (K_HOT + 3, proj)

    # Row tiling: cap at TILE_N_MAX, keep sublane (8) alignment; pad rows with 0
    # (padding_idx row -> zero embedding, padded rows dropped after the call).
    tile_n = TILE_N_MAX if n >= TILE_N_MAX else _round_up(n, 8)
    n_pad = _round_up(n, tile_n)
    if n_pad != n:
        idx = jnp.pad(idx, ((0, n_pad - n), (0, 0)))
    grid = (n_pad // tile_n,)

    out = pl.pallas_call(
        cate_proj_kernel,
        out_shape=jax.ShapeDtypeStruct((n_pad, CATE_PROJ), jnp.float32),
        grid=grid,
        in_specs=[
            pl.BlockSpec((tile_n, CATE_NUM), lambda i: (i, 0)),
            pl.BlockSpec((K_HOT + 3, CATE_PROJ), lambda i: (0, 0)),  # broadcast table
        ],
        out_specs=pl.BlockSpec((tile_n, CATE_PROJ), lambda i: (i, 0)),
        compiler_params=pltpu.CompilerParams(
            dimension_semantics=("parallel",),   # v7x: shard rows across 2 TCs
        ),
    )(idx, tbl)

    return out[:n].reshape(b, s, CATE_PROJ)


# ---------------------------- reference (pure JAX) ----------------------------
def reference_forward(cate_x, params):
    b, s, _ = cate_x.shape
    emb = jnp.take(params["emb"], cate_x, axis=0)                # (B,S,CATE_NUM,EMB)
    emb = emb.reshape(b, s, CATE_NUM * CATE_EMB)                 # view(B, S, -1)
    x = emb @ params["w"] + params["b"]
    mu = jnp.mean(x, axis=-1, keepdims=True)
    var = jnp.mean((x - mu) ** 2, axis=-1, keepdims=True)
    return (x - mu) * lax.rsqrt(var + LN_EPS) * params["gamma"] + params["beta"]


# ------------------------------- init / main ----------------------------------
def init_params(key):
    ks = jax.random.split(key, 4)
    u = lambda k, shape, sc: jax.random.uniform(k, shape, jnp.float32, -sc, sc)
    cate_in = CATE_NUM * CATE_EMB
    emb = u(ks[0], (OFFSET, CATE_EMB), 1.0)
    return {
        "emb": emb.at[0].set(0.0),                               # padding_idx = 0
        # TODO(synk): padding_idx gradient zeroing is a training-time concern,
        # not part of this forward pass.
        "w": u(ks[1], (cate_in, CATE_PROJ), 1.0 / cate_in ** 0.5),
        "b": u(ks[2], (1, CATE_PROJ), 1.0 / cate_in ** 0.5),
        "gamma": jnp.ones((1, CATE_PROJ), jnp.float32),          # nn.LayerNorm init
        "beta": jnp.zeros((1, CATE_PROJ), jnp.float32),
    }


if __name__ == "__main__":
    key = jax.random.PRNGKey(0)
    k_param, k_idx, k_idx2 = jax.random.split(key, 3)
    params = init_params(k_param)

    # Small shape matching the module spec (batch=2, max_seq_len=8, cate_num=3).
    cate_x = jax.random.randint(k_idx, (2, 8, CATE_NUM), 0, OFFSET, jnp.int32)
    out = jax.block_until_ready(cate_embedding_projector(cate_x, params))
    assert out.shape == (2, 8, CATE_PROJ), out.shape
    ref = reference_forward(cate_x, params)
    assert jnp.allclose(out, ref, rtol=1e-3, atol=1e-3), (
        f"mismatch: max abs diff {jnp.max(jnp.abs(out - ref))}")

    # Larger shape exercising the row grid (N = 1024 -> 2 tiles of 512).
    cate_x2 = jax.random.randint(k_idx2, (8, 128, CATE_NUM), 0, OFFSET, jnp.int32)
    out2 = jax.block_until_ready(cate_embedding_projector(cate_x2, params))
    ref2 = reference_forward(cate_x2, params)
    assert jnp.allclose(out2, ref2, rtol=1e-3, atol=1e-3), (
        f"mismatch (grid path): max abs diff {jnp.max(jnp.abs(out2 - ref2))}")

    print("KERNEL_OK")
</pallas_src>

<mosaic_0001>
module attributes {stable_mosaic.version = 11 : i64} {
  func.func @cate_proj_kernel(%arg0: i32, %arg1: memref<16x3xi32, #tpu.memory_space<vmem>>, %arg2: memref<33x16xf32, #tpu.memory_space<vmem>>, %arg3: memref<16x16xf32, #tpu.memory_space<vmem>>) attributes {dimension_semantics = [#tpu.dimension_semantics<parallel>], iteration_bounds = array<i64: 1>, scalar_prefetch = 0 : i64, scratch_operands = 0 : i64, tpu.core_type = #tpu.core_type<tc>, window_params = [{transform_indices = @transform_0, window_bounds = array<i64: 16, 3>}, {pipeline_mode = #tpu.pipeline_mode<synchronous>, transform_indices = @transform_1, window_bounds = array<i64: 33, 16>}, {transform_indices = @transform_2, window_bounds = array<i64: 16, 16>}]} {
    %0 = tpu.iota {dimensions = array<i32: 1>} : vector<16x30xi32>
    %cst = arith.constant 0.000000e+00 : f32
    %1 = vector.broadcast %cst : f32 to vector<16x30xf32>
    %c0 = arith.constant 0 : index
    %c0_0 = arith.constant 0 : index
    %2 = vector.load %arg1[%c0, %c0_0] : memref<16x3xi32, #tpu.memory_space<vmem>>, vector<16x1xi32>
    %c0_i32 = arith.constant 0 : i32
    %3 = vector.broadcast %c0_i32 : i32 to vector<16x1xi32>
    %4 = arith.addi %2, %3 : vector<16x1xi32>
    %5 = vector.broadcast %4 : vector<16x1xi32> to vector<16x30xi32>
    %6 = arith.cmpi eq, %5, %0 : vector<16x30xi32>
    %7 = arith.extui %6 : vector<16x30xi1> to vector<16x30xi32>
    %8 = arith.sitofp %7 : vector<16x30xi32> to vector<16x30xf32>
    %9 = arith.addf %1, %8 : vector<16x30xf32>
    %c0_1 = arith.constant 0 : index
    %c1 = arith.constant 1 : index
    %10 = vector.load %arg1[%c0_1, %c1] : memref<16x3xi32, #tpu.memory_space<vmem>>, vector<16x1xi32>
    %c10_i32 = arith.constant 10 : i32
    %11 = vector.broadcast %c10_i32 : i32 to vector<16x1xi32>
    %12 = arith.addi %10, %11 : vector<16x1xi32>
    %13 = vector.broadcast %12 : vector<16x1xi32> to vector<16x30xi32>
    %14 = arith.cmpi eq, %13, %0 : vector<16x30xi32>
    %15 = arith.extui %14 : vector<16x30xi1> to vector<16x30xi32>
    %16 = arith.sitofp %15 : vector<16x30xi32> to vector<16x30xf32>
    %17 = arith.addf %9, %16 : vector<16x30xf32>
    %c0_2 = arith.constant 0 : index
    %c2 = arith.constant 2 : index
    %18 = vector.load %arg1[%c0_2, %c2] : memref<16x3xi32, #tpu.memory_space<vmem>>, vector<16x1xi32>
    %c20_i32 = arith.constant 20 : i32
    %19 = vector.broadcast %c20_i32 : i32 to vector<16x1xi32>
    %20 = arith.addi %18, %19 : vector<16x1xi32>
    %21 = vector.broadcast %20 : vector<16x1xi32> to vector<16x30xi32>
    %22 = arith.cmpi eq, %21, %0 : vector<16x30xi32>
    %23 = arith.extui %22 : vector<16x30xi1> to vector<16x30xi32>
    %24 = arith.sitofp %23 : vector<16x30xi32> to vector<16x30xf32>
    %25 = arith.addf %17, %24 : vector<16x30xf32>
    %c0_3 = arith.constant 0 : index
    %c0_4 = arith.constant 0 : index
    %26 = vector.load %arg2[%c0_3, %c0_4] : memref<33x16xf32, #tpu.memory_space<vmem>>, vector<30x16xf32>
    %c30 = arith.constant 30 : index
    %c0_5 = arith.constant 0 : index
    %27 = vector.load %arg2[%c30, %c0_5] : memref<33x16xf32, #tpu.memory_space<vmem>>, vector<1x16xf32>
    %c31 = arith.constant 31 : index
    %c0_6 = arith.constant 0 : index
    %28 = vector.load %arg2[%c31, %c0_6] : memref<33x16xf32, #tpu.memory_space<vmem>>, vector<1x16xf32>
    %c32 = arith.constant 32 : index
    %c0_7 = arith.constant 0 : index
    %29 = vector.load %arg2[%c32, %c0_7] : memref<33x16xf32, #tpu.memory_space<vmem>>, vector<1x16xf32>
    %cst_8 = arith.constant dense<0.000000e+00> : vector<16x16xf32>
    %30 = tpu.matmul %25, %26, %cst_8 {dimension_numbers = #tpu.dot_dimension_numbers<[1], [0], [0], [1], [0, 0, 1, 1], [], []>} : vector<16x30xf32>, vector<30x16xf32>, vector<16x16xf32> -> vector<16x16xf32>
    %31 = vector.broadcast %27 : vector<1x16xf32> to vector<16x16xf32>
    %32 = arith.addf %30, %31 : vector<16x16xf32>
    %cst_9 = arith.constant dense<0.000000e+00> : vector<16xf32>
    %33 = vector.multi_reduction <add>, %32, %cst_9 [1] : vector<16x16xf32> to vector<16xf32>
    %34 = vector.shape_cast %33 : vector<16xf32> to vector<16x1xf32>
    %cst_10 = arith.constant 1.600000e+01 : f32
    %35 = vector.broadcast %cst_10 : f32 to vector<16x1xf32>
    %36 = arith.divf %34, %35 : vector<16x1xf32>
    %37 = vector.broadcast %36 : vector<16x1xf32> to vector<16x16xf32>
    %38 = arith.subf %32, %37 : vector<16x16xf32>
    %39 = arith.mulf %38, %38 : vector<16x16xf32>
    %cst_11 = arith.constant dense<0.000000e+00> : vector<16xf32>
    %40 = vector.multi_reduction <add>, %39, %cst_11 [1] : vector<16x16xf32> to vector<16xf32>
    %41 = vector.shape_cast %40 : vector<16xf32> to vector<16x1xf32>
    %cst_12 = arith.constant 1.600000e+01 : f32
    %42 = vector.broadcast %cst_12 : f32 to vector<16x1xf32>
    %43 = arith.divf %41, %42 : vector<16x1xf32>
    %44 = vector.broadcast %36 : vector<16x1xf32> to vector<16x16xf32>
    %45 = arith.subf %32, %44 : vector<16x16xf32>
    %cst_13 = arith.constant 9.99999974E-6 : f32
    %46 = vector.broadcast %cst_13 : f32 to vector<16x1xf32>
    %47 = arith.addf %43, %46 : vector<16x1xf32>
    %48 = math.rsqrt %47 : vector<16x1xf32>
    %49 = vector.broadcast %48 : vector<16x1xf32> to vector<16x16xf32>
    %50 = arith.mulf %45, %49 : vector<16x16xf32>
    %51 = vector.broadcast %28 : vector<1x16xf32> to vector<16x16xf32>
    %52 = arith.mulf %50, %51 : vector<16x16xf32>
    %53 = vector.broadcast %29 : vector<1x16xf32> to vector<16x16xf32>
    %54 = arith.addf %52, %53 : vector<16x16xf32>
    %c0_14 = arith.constant 0 : index
    %c0_15 = arith.constant 0 : index
    %55 = vector.load %arg3[%c0_14, %c0_15] : memref<16x16xf32, #tpu.memory_space<vmem>>, vector<16x16xf32>
    tpu.vector_store %arg3[%c0_14, %c0_15], %54 {strides = array<i32>} : memref<16x16xf32, #tpu.memory_space<vmem>>, vector<16x16xf32>,
    return
  }
  func.func @transform_0(%arg0: i32) -> (i32, i32) {
    %c0_i32 = arith.constant 0 : i32
    %c0_i32_0 = arith.constant 0 : i32
    return %arg0, %c0_i32 : i32, i32
  }
  func.func @transform_1(%arg0: i32) -> (i32, i32) {
    %c0_i32 = arith.constant 0 : i32
    %c0_i32_0 = arith.constant 0 : i32
    %c0_i32_1 = arith.constant 0 : i32
    return %c0_i32, %c0_i32_0 : i32, i32
  }
  func.func @transform_2(%arg0: i32) -> (i32, i32) {
    %c0_i32 = arith.constant 0 : i32
    %c0_i32_0 = arith.constant 0 : i32
    return %arg0, %c0_i32 : i32, i32
  }
}

</mosaic_0001>

<bundles_post_ra>
// kernel: cate_embedding_projector.1
= control target key start
LH: loop header
LB: loop body
LE: loop exit
PB: predicated region body
PF: predicated region fallthrough
CT: control target
= control target key end

     0   :  { %v298_v2 = vmov 0   ;;  %s366_s0 = inlined_call_operand.vmem [shape: s32[16,3], index: 0, kind: input, shape index: {}]   ;;  %s367_s1 = inlined_call_operand.vmem [shape: f32[33,16], index: 1, kind: input, shape index: {}]   ;;  %s368_s2 = inlined_call_operand.hbm [shape: f32[16,16], index: 2, kind: output, shape index: {}]  }
   0x1   :  { %v15_v0 = vld [vmem:[%s366_s0 + $0x8] sm:$0xff]  ;;  %v14_v1 = vld [vmem:[%s366_s0] sm:$0xff]  ;;  %266 = vset.pattern.permute.xlu1 %v298_v2  ;;  %264 = vset.pattern.permute.xlu0 %v298_v2 }
   0x2   :  { %7 = vsyncpa [#allocation3], 0  ;;  %20 = vperm.xlu1 %266, %v15_v0   ;;  %17 = vperm.xlu0 %264, %v14_v1   ;;  %v31_v3 = vadd.s32 10, %v15_v0  ;;  %v30_v4 = vadd.s32 10, %v14_v1  ;;  %v299_v5 = vmov 1   ;;  %v62_v6 = vld [vmem:[%s367_s1] sm:$0xff]  ;;  %v12_v15 = vlaneseq }
   0x3   :  { %v63_v7 = vld [vmem:[%s367_s1 + $0x8] sm:$0xff]  ;;  %v46_v9 = vadd.s32 20, %v14_v1  ;;  %v47_v10 = vadd.s32 20, %v15_v0  ;;  %v64_v11 = vld [vmem:[%s367_s1 + $0x10] sm:$0xff]  ;;  %v65_v12 = vld [vmem:[%s367_s1 + $0x18] sm:$0x3f] }
   0x4   :  { %v246_v8 = vpack.c.bf16 %v63_v7, %v62_v6  ;;  %v300_v13 = vmov 2   ;;  %vm80_vm0 = vcmask 1045504   ;;  %v250_v14 = vpack.c.bf16 %v65_v12, %v64_v11  ;;  %v223_v34 = vld [vmem:[%s367_s1 + $0x1e] ss:$0 sm:$0xff]  ;;  %v227_v58 = vld [vmem:[%s367_s1 + $0x1f] ss:$0 sm:$0xff] }
   0x5   :  { %vm301_vm1 = vmmov 1   ;;  %v13_v18 = vand.u32 127, %v12_v15  ;;  %v302_v21 = vmov 0.0   ;;  %vm73_vm9 = vcmask 244736   ;;  %v228_v62 = vld [vmem:[%s367_s1 + $0x20] ss:$0 sm:$0xff] }
   0x6   :  { %267 = vset.pattern.permute.xlu1 %v299_v5  ;;  %265 = vset.pattern.permute.xlu0 %v299_v5  ;;  %vm251_vm2 = vmpackc.low %vm80_vm0, %vm301_vm1  ;;  %vm159_vm10 = vcmask 130048   ;;  %s303_s26 = smov [#allocation2]  }
   0x7   :  { %36 = vperm.xlu1 %267, %v31_v3   ;;  %33 = vperm.xlu0 %265, %v30_v4   ;;  %s206_s27 = sshll.u32 %s303_s26, 4  ;;  %s207_s27 = int_to_ptr.vmem [resolvable:$true] %s206_s27 }
   0x8   :  { %247 = vmatprep.subr.bf16.mxu0 %v246_v8  ;;  %s274_s28 = scalar_lea.vmem %s207_s27, 256  ;;  %p279_p1 = scmp.lt.s32.totalorder %s207_s27, %s207_s27 }
   0x9   :  { %249 = vmatpush3.bf16.msra.mxu0 %v246_v8  ;;  %p275_p0 = scmp.ne.s32.totalorder %s207_s27, %s274_s28  ;;  %p280_p2 = scmp.lt.s32.totalorder %s274_s28, %s274_s28 }
   0xa   :  { %252 = vmatprep.subr.msk.bf16.mxu0 %vm251_vm2, %v250_v14 }
   0xb   :  { %268 = vset.pattern.permute.xlu1 %v300_v13  ;;  %269 = vset.pattern.permute.xlu0 %v300_v13  ;;  %p281_p3 = por %p280_p2, %p279_p1 }
   0xc   :  { %49 = vperm.xlu1 %268, %v46_v9   ;;  %52 = vperm.xlu0 %269, %v47_v10  }
   0xd   :  { %255 = vmatpush3.bf16.msk.msra.mxu0 %vm251_vm2, %v250_v14  ;;  %p282_p4 = pnand %p281_p3, %p275_p0 }
  0x81   :  { %v21_v16 = vpop.permute.xlu1 %20  ;;  %v18_v17 = vpop.permute.xlu0 %17 }
  0x82   :  { %vm23_vm5 = vcmp.eq.s32.totalorder %v21_v16, %v13_v18  ;;  %vm22_vm6 = vcmp.eq.s32.totalorder %v18_v17, %v13_v18 }
  0x83   :  { %v218_v24 = vsel %vm23_vm5, 1.0, %v302_v21  ;;  %v217_v25 = vsel %vm22_vm6, 1.0, %v302_v21 }
  0x86   :  { %v37_v19 = vpop.permute.xlu1 %36  ;;  %v34_v20 = vpop.permute.xlu0 %33 }
  0x87   :  { %vm39_vm3 = vcmp.eq.s32.totalorder %v37_v19, %v13_v18  ;;  %vm38_vm4 = vcmp.eq.s32.totalorder %v34_v20, %v13_v18 }
  0x88   :  { %v220_v22 = vsel %vm39_vm3, 1.0, %v302_v21  ;;  %v219_v23 = vsel %vm38_vm4, 1.0, %v302_v21 }
  0x89   :  { %v45_v28 = vadd.f32 %v220_v22, %v218_v24  ;;  %v44_v29 = vadd.f32 %v219_v23, %v217_v25 }
  0x8b   :  { %v50_v26 = vpop.permute.xlu1 %49  ;;  %v53_v27 = vpop.permute.xlu0 %52 }
  0x8c   :  { %vm54_vm7 = vcmp.eq.s32.totalorder %v50_v26, %v13_v18  ;;  %vm55_vm8 = vcmp.eq.s32.totalorder %v53_v27, %v13_v18 }
  0x8d   :  { %v221_v30 = vsel %vm54_vm7, 1.0, %v302_v21  ;;  %v222_v31 = vsel %vm55_vm8, 1.0, %v302_v21 }
  0x8e   :  { %v61_v32 = vadd.f32 %v222_v31, %v45_v28  ;;  %v60_v33 = vadd.f32 %v221_v30, %v44_v29 }
  0x90   :  { %243 = vmatprep.mubr.msk.f32.mxu0 %vm73_vm9, %v60_v33 }
  0x91   :  { %244 = vmatmul.mubr.msk.f32.vlgmr.msra.gmra.mrb[0].mxu0 %vm73_vm9, %v61_v32 }
 0x164   :  { %v245_v35 = vpop.f32.mrb[0].mxu0 }
 0x165   :  { %v156_v36 = vadd.f32 %v245_v35, %v223_v34  ;;  %v150_v37 = vpop.f32.mrb[1].mxu0 }
 0x166   :  { %v151_v38 = vadd.f32 %v223_v34, %v150_v37 }
 0x167   :  { %v163_v39 = vsel %vm159_vm10, %v156_v36, 0.0 }
 0x168   :  { %164 = vadd.xlane.f32.xlu0 %v163_v39  ;;  %v160_v40 = vsel %vm159_vm10, %v151_v38, 0.0 }
 0x169   :  { %161 = vadd.xlane.f32.xlu1 %v160_v40 }
 0x1f5   :  { %v165_v41 = vpop.xlane.xlu0 %164 }
 0x1f6   :  { %v168_v42 = vmul.f32 0.0625, %v165_v41  ;;  %v162_v43 = vpop.xlane.xlu1 %161 }
 0x1f7   :  { %v167_v44 = vmul.f32 0.0625, %v162_v43 }
 0x1f8   :  { %v170_v45 = vsub.f32 %v156_v36, %v168_v42 }
 0x1f9   :  { %v169_v46 = vsub.f32 %v151_v38, %v167_v44 }
 0x1fa   :  { %v172_v47 = vmul.f32 %v170_v45, %v170_v45 }
 0x1fb   :  { %v171_v48 = vmul.f32 %v169_v46, %v169_v46 }
 0x1fc   :  { %v176_v49 = vsel %vm159_vm10, %v172_v47, 0.0 }
 0x1fd   :  { %177 = vadd.xlane.f32.xlu0 %v176_v49  ;;  %v173_v50 = vsel %vm159_vm10, %v171_v48, 0.0 }
 0x1fe   :  { %174 = vadd.xlane.f32.xlu1 %v173_v50 }
 0x28a   :  { %v178_v51 = vpop.xlane.xlu0 %177 }
 0x28b   :  { %v180_v52 = vmul.f32 0.0625, %v178_v51  ;;  %v175_v53 = vpop.xlane.xlu1 %174 }
 0x28c   :  { %v179_v54 = vmul.f32 0.0625, %v175_v53 }
 0x28d   :  { %v182_v55 = vadd.f32 1e-05, %v180_v52 }
 0x28e   :  { %v181_v56 = vadd.f32 1e-05, %v179_v54 }
 0x28f   :  { %270 = vrsqrt.f32 %v182_v55 }
 0x290   :  { %272 = vrsqrt.f32 %v181_v56 }
 0x299   :  { %v271_v57 = vpop.eup %270 }
 0x29a   :  { %v273_v59 = vpop.eup %272  ;;  %v186_v60 = vmul.f32 %v271_v57, %v170_v45 }
 0x29b   :  { %v185_v61 = vmul.f32 %v273_v59, %v169_v46 }
 0x29c   :  { %v192_v63 = vmul.f32 %v227_v58, %v186_v60 }
 0x29d   :  { %v191_v0 = vmul.f32 %v227_v58, %v185_v61 }
 0x29e   :  { %v198_v1 = vadd.f32 %v228_v62, %v192_v63 }
 0x29f   :  { %v197_v2 = vadd.f32 %v228_v62, %v191_v0 }
 0x2a0   :  { %200 = vst.msk [vmem:[#allocation2 + $0x8] sm:$0xff] %vm159_vm10, %v198_v1 }
 0x2a1   :  { %199 = vst.msk [vmem:[#allocation2] sm:$0xff] %vm159_vm10, %v197_v2 }
 0x2a2   :  { %285 = shalt.err (!%p282_p4)
}
 0x2a3   :  { %s286_s30 = scalar_lea.hbm %s368_s2, 256 }
 0x2a4   :  { %p287_p5 = scmp.ne.s32.totalorder %s368_s2, %s286_s30  ;;  %p290_p6 = scmp.lt.u32.totalorder %s286_s30, %s368_s2 }
 0x2a6   :  { %p292_p7 = pnand %p290_p6, %p287_p5 }
 0x2a8   :  { %295 = shalt.err (!%p292_p7)
}
 0x2a9   :  { %s304_s7 = smov 128   ;;  %s305_s8 = smov 8  }
 0x2aa   :  { %212 = dma.vmem_to_hbm [thread:$0]  %s207_s27, 256, %s368_s2, [#allocation3], %s304_s7, %s304_s7, %s305_s8  }
 0x2ab   :  { %296 = dma.done.wait [#allocation3], 256  }
 0x2ac   :  { %297 = vsyncadd [#allocation3], 4294967040 }
 0x2ad   :  { %216 = vsyncpa [#allocation3], 1 }

</bundles_post_ra>
